<compile_context>
chip_gen: v7x
topology: tpu7x:2x2x1
jax: 0.10.0
libtpu: 0.0.40
codegen_flags: <defaults>
</compile_context>

<pallas_src>
import functools
import math

import jax
import jax.numpy as jnp
from jax.experimental import pallas as pl
from jax.experimental.pallas import tpu as pltpu


# ----------------------------- Pallas kernels ------------------------------

def _attn_norm_kernel(x_ref, mb_ref, wq_ref, bq_ref, wkv_ref, bkv_ref,
                      wo_ref, bo_ref, g1_ref, o_ref, *,
                      num_heads, num_groups, head_dim, tq, scale, eps):
    """Fused per-(batch, q-tile) block:
         QKV projection -> GQA attention -> output projection -> +residual
         -> RMSNorm.

    x_ref    : [S, E]   f32   tokens of this batch element (full sequence)
    mb_ref   : [1, S]   f32   additive key-mask bias (0 or -1e9)
    wq_ref   : [E, H*Hd]        bf16
    bq_ref   : [1, H*Hd]        f32
    wkv_ref  : [E, 2*G*Hd]      bf16  (wk | wv)
    bkv_ref  : [1, 2*G*Hd]      f32
    wo_ref   : [H*Hd, E]        bf16
    bo_ref   : [1, E]           f32
    g1_ref   : [1, E]           f32   RMSNorm gamma
    o_ref    : [tq, E]          f32   normalized block output
    """
    qi = pl.program_id(1)
    row0 = pl.multiple_of(qi * tq, tq)

    x_full = x_ref[...]                                  # [S, E] f32
    x_q = x_ref[pl.ds(row0, tq), :]                      # [tq, E] f32 (residual)

    # Projections (bf16 operands, f32 accumulation).
    q = jnp.dot(x_q.astype(jnp.bfloat16), wq_ref[...],
                preferred_element_type=jnp.float32) + bq_ref[...]      # [tq, Hq]
    kv = jnp.dot(x_full.astype(jnp.bfloat16), wkv_ref[...],
                 preferred_element_type=jnp.float32) + bkv_ref[...]    # [S, 2*G*Hd]
    qb = q.astype(jnp.bfloat16)
    kvb = kv.astype(jnp.bfloat16)                        # cast once, reused by heads

    bias = mb_ref[...]                                   # [1, S] additive mask
    nkv = num_groups * head_dim
    rep = num_heads // num_groups

    head_outs = []
    for g in range(num_groups):
        k_g = kvb[:, g * head_dim:(g + 1) * head_dim]                  # [S, Hd]
        v_g = kvb[:, nkv + g * head_dim:nkv + (g + 1) * head_dim]      # [S, Hd]
        for r in range(rep):
            h = g * rep + r
            q_h = qb[:, h * head_dim:(h + 1) * head_dim]               # [tq, Hd]
            s = jax.lax.dot_general(
                q_h, k_g, (((1,), (1,)), ((), ())),
                preferred_element_type=jnp.float32) * scale + bias     # [tq, S]
            s_max = jnp.max(s, axis=-1, keepdims=True)
            p = jnp.exp(s - s_max)
            p = p * pl.reciprocal(jnp.sum(p, axis=-1, keepdims=True),
                                  approx=True)
            head_outs.append(jnp.dot(p.astype(jnp.bfloat16), v_g,
                                     preferred_element_type=jnp.float32))

    attn = jnp.concatenate(head_outs, axis=-1)           # [tq, Hq] f32 (lane-dense)

    # Output projection + residual + RMSNorm, single lane-dense store.
    y = jnp.dot(attn.astype(jnp.bfloat16), wo_ref[...],
                preferred_element_type=jnp.float32) + bo_ref[...]
    y = x_q + y
    ms = jnp.mean(y * y, axis=-1, keepdims=True)
    o_ref[...] = y * jax.lax.rsqrt(ms + eps) * g1_ref[...]
    # TODO(synk): GroupedQueryAttention's `target_size` positional-embedding
    # path is not in the provided source; omitted here.


def _ffn_norm_kernel(x_ref, w1_ref, b1_ref, w2_ref, b2_ref, g2_ref,
                     alpha_ref, o_ref, *, eps):
    """Fused MLP (Linear -> PReLU -> Linear) + residual add + RMSNorm.

    x_ref: [tm, E] f32, w1: [E, F] bf16, w2: [F, E] bf16, alpha in SMEM.
    """
    x = x_ref[...]
    h = jnp.dot(x.astype(jnp.bfloat16), w1_ref[...],
                preferred_element_type=jnp.float32) + b1_ref[...]
    alpha = alpha_ref[0]                                 # PReLU shared parameter
    h = jnp.where(h > 0, h, alpha * h)
    m = jnp.dot(h.astype(jnp.bfloat16), w2_ref[...],
                preferred_element_type=jnp.float32) + b2_ref[...]
    y = x + m
    ms = jnp.mean(y * y, axis=-1, keepdims=True)
    o_ref[...] = y * jax.lax.rsqrt(ms + eps) * g2_ref[...]


# ----------------------------- kernel wrappers ------------------------------

def _vmem_limit(est_bytes):
    """Explicit scoped-VMEM request, clamped to be safe on v5e/v6e/v7x."""
    return int(min(64 << 20, max(32 << 20, est_bytes + (4 << 20))))


def _choose_q_tile(S, cap=256):
    """Query-row tile: full S when small, otherwise a multiple-of-8 divisor."""
    if S <= cap:
        return S
    for tq in range(cap, 7, -8):
        if S % tq == 0:
            return tq
    return S


def attention_norm_block(x, mask_bias, p, num_heads, num_groups, head_dim,
                         eps=1e-6):
    """x: [B, S, E], mask_bias: [B, 1, S] -> RMSNorm(x + attn_out(x)) [B, S, E]."""
    B, S, E = x.shape
    hidden = num_heads * head_dim
    nkv2 = 2 * num_groups * head_dim
    tq = _choose_q_tile(S)
    n_qt = S // tq

    kern = functools.partial(
        _attn_norm_kernel, num_heads=num_heads, num_groups=num_groups,
        head_dim=head_dim, tq=tq, scale=1.0 / math.sqrt(head_dim), eps=eps)

    est = (2 * S * E * 4                                  # x (double-buffered)
           + 2 * 2 * (E * hidden + E * nkv2 + hidden * E)  # bf16 weights x2
           + 2 * tq * E * 4                               # out tiles
           + S * nkv2 * 6 + tq * hidden * 6 + tq * S * 8)  # live intermediates
    return pl.pallas_call(
        kern,
        grid=(B, n_qt),
        out_shape=jax.ShapeDtypeStruct((B, S, E), jnp.float32),
        in_specs=[pl.BlockSpec((None, S, E), lambda b, qi: (b, 0, 0)),
                  pl.BlockSpec((None, 1, S), lambda b, qi: (b, 0, 0)),
                  pl.BlockSpec((E, hidden), lambda b, qi: (0, 0)),
                  pl.BlockSpec((1, hidden), lambda b, qi: (0, 0)),
                  pl.BlockSpec((E, nkv2), lambda b, qi: (0, 0)),
                  pl.BlockSpec((1, nkv2), lambda b, qi: (0, 0)),
                  pl.BlockSpec((hidden, E), lambda b, qi: (0, 0)),
                  pl.BlockSpec((1, E), lambda b, qi: (0, 0)),
                  pl.BlockSpec((1, E), lambda b, qi: (0, 0))],
        out_specs=pl.BlockSpec((None, tq, E), lambda b, qi: (b, qi, 0)),
        compiler_params=pltpu.CompilerParams(
            dimension_semantics=("parallel", "parallel"),
            vmem_limit_bytes=_vmem_limit(est)),
    )(x, mask_bias, p['wq'], p['bq'], p['wkv'], p['bkv'],
      p['wo'], p['bo'], p['norm1_g'])


def ffn_residual_norm(x, w1, b1, alpha, w2, b2, g, eps=1e-6, cap=512):
    """x: [M, E] -> RMSNorm(x + Linear(PReLU(Linear(x)))) [M, E]."""
    M, E = x.shape
    F = w1.shape[1]
    if M <= cap:
        tm, Mp, xp = M, M, x
    else:
        tm = cap
        Mp = ((M + tm - 1) // tm) * tm
        xp = jnp.pad(x, ((0, Mp - M), (0, 0))) if Mp != M else x

    est = (2 * 2 * tm * E * 4                              # in/out tiles x2
           + 2 * 2 * (E * F + F * E)                       # bf16 weights x2
           + tm * F * 8)                                   # live intermediate h
    out = pl.pallas_call(
        functools.partial(_ffn_norm_kernel, eps=eps),
        grid=(Mp // tm,),
        out_shape=jax.ShapeDtypeStruct((Mp, E), jnp.float32),
        in_specs=[pl.BlockSpec((tm, E), lambda i: (i, 0)),
                  pl.BlockSpec((E, F), lambda i: (0, 0)),
                  pl.BlockSpec((1, F), lambda i: (0, 0)),
                  pl.BlockSpec((F, E), lambda i: (0, 0)),
                  pl.BlockSpec((1, E), lambda i: (0, 0)),
                  pl.BlockSpec((1, E), lambda i: (0, 0)),
                  pl.BlockSpec(memory_space=pltpu.MemorySpace.SMEM)],
        out_specs=pl.BlockSpec((tm, E), lambda i: (i, 0)),
        compiler_params=pltpu.CompilerParams(
            dimension_semantics=("parallel",),
            vmem_limit_bytes=_vmem_limit(est)),
    )(xp, w1, b1, w2, b2, g, alpha)
    return out[:M] if Mp != M else out
    # TODO(synk): at very large E on v7x, the F (4E) dimension should get its
    # own 'arbitrary' grid axis + VMEM accumulator instead of fully-resident
    # bf16 w1/w2; not needed at these sizes.


# ------------------------------ model pieces -------------------------------

def transformer_block_forward(p, x, mask_bias, num_heads, num_groups):
    """One TransformerBlock: self-attn -> norm1 -> MLP -> norm2 (dropout=0)."""
    B, S, E = x.shape
    hidden = p['wo'].shape[0]
    head_dim = hidden // num_heads

    # x1 = norm1(query + attention(query, query, query, mask))  -- fused kernel.
    x1 = attention_norm_block(x, mask_bias, p, num_heads, num_groups, head_dim)
    # out = norm2(x1 + mlp(x1))  -- fused kernel.
    M = B * S
    out = ffn_residual_norm(x1.reshape(M, E), p['w1'], p['b1'], p['prelu_a'],
                            p['w2'], p['b2'], p['norm2_g'])
    return out.reshape(B, S, E)


def encoder_forward(params, x, key_mask, num_heads, num_groups):
    """key_mask: [B, S] with 1 = attend, 0 = masked (or None)."""
    B, S, _ = x.shape
    if key_mask is None:
        mask_bias = jnp.zeros((B, 1, S), jnp.float32)
    else:
        # tiny additive key-mask bias, broadcast over queries inside the kernel
        mask_bias = (key_mask.astype(jnp.float32).reshape(B, 1, S) - 1.0) * 1e9
    # TODO(synk): arbitrary per-query [B,1,S,S] masks would need the full-mask
    # DMA path; only key/padding masks are supported in this kernel.
    for layer_p in params['layers']:
        x = transformer_block_forward(layer_p, x, mask_bias,
                                      num_heads, num_groups)
    return x


# ------------------------------- init helpers ------------------------------

def _xavier(key, shape):
    fan_in, fan_out = shape
    limit = math.sqrt(6.0 / (fan_in + fan_out))
    return jax.random.uniform(key, shape, jnp.float32, -limit, limit)


def init_layer(key, emb, hidden, num_heads, num_groups):
    head_dim = hidden // num_heads
    nkv = num_groups * head_dim
    kq, kk, kv, ko, k1, k2 = jax.random.split(key, 6)
    wkv = jnp.concatenate([_xavier(kk, (emb, nkv)),
                           _xavier(kv, (emb, nkv))], axis=1)
    return dict(
        wq=_xavier(kq, (emb, hidden)).astype(jnp.bfloat16),
        bq=jnp.zeros((1, hidden), jnp.float32),
        wkv=wkv.astype(jnp.bfloat16),
        bkv=jnp.zeros((1, 2 * nkv), jnp.float32),
        wo=_xavier(ko, (hidden, emb)).astype(jnp.bfloat16),
        bo=jnp.zeros((1, emb), jnp.float32),
        norm1_g=jnp.ones((1, emb), jnp.float32),
        norm2_g=jnp.ones((1, emb), jnp.float32),
        w1=_xavier(k1, (emb, 4 * emb)).astype(jnp.bfloat16),
        b1=jnp.zeros((1, 4 * emb), jnp.float32),
        prelu_a=jnp.full((1,), 0.25, jnp.float32),    # PyTorch PReLU default
        w2=_xavier(k2, (4 * emb, emb)).astype(jnp.bfloat16),
        b2=jnp.zeros((1, emb), jnp.float32),
    )
    # TODO(synk): CustomizedNormalization('batch', emb_size) source not
    # provided; this implementation targets norm_type='rms_norm'.


def init_encoder(key, emb, hidden, num_layers, num_heads, num_groups):
    layers = []
    for _ in range(num_layers):
        key, sub = jax.random.split(key)
        layers.append(init_layer(sub, emb, hidden, num_heads, num_groups))
    return dict(layers=layers)


# ----------------------------------- main -----------------------------------

if __name__ == "__main__":
    B, S = 2, 8
    emb_size, hidden_size = 32, 32
    num_layers, num_heads, num_groups = 2, 4, 2

    key = jax.random.PRNGKey(0)
    kx, kp = jax.random.split(key)
    x = jax.random.normal(kx, (B, S, emb_size), jnp.float32)
    key_mask = jnp.ones((B, S), jnp.float32)       # 1 = attend (encoder self-attn)

    params = init_encoder(kp, emb_size, hidden_size, num_layers,
                          num_heads, num_groups)

    out = encoder_forward(params, x, key_mask, num_heads, num_groups)
    out = jax.block_until_ready(out)

    assert out.shape == (B, S, emb_size), out.shape
    assert bool(jnp.all(jnp.isfinite(out)))
    print("KERNEL_OK")
</pallas_src>

<mosaic_0001>
module attributes {stable_mosaic.version = 11 : i64} {
  func.func @_attn_norm_kernel(%arg0: i32, %arg1: i32, %arg2: memref<1x8x32xf32, #tpu.memory_space<vmem>>, %arg3: memref<1x1x8xf32, #tpu.memory_space<vmem>>, %arg4: memref<32x32xbf16, #tpu.memory_space<vmem>>, %arg5: memref<1x32xf32, #tpu.memory_space<vmem>>, %arg6: memref<32x32xbf16, #tpu.memory_space<vmem>>, %arg7: memref<1x32xf32, #tpu.memory_space<vmem>>, %arg8: memref<32x32xbf16, #tpu.memory_space<vmem>>, %arg9: memref<1x32xf32, #tpu.memory_space<vmem>>, %arg10: memref<1x32xf32, #tpu.memory_space<vmem>>, %arg11: memref<1x8x32xf32, #tpu.memory_space<vmem>>) attributes {dimension_semantics = [#tpu.dimension_semantics<parallel>, #tpu.dimension_semantics<parallel>], iteration_bounds = array<i64: 2, 1>, scalar_prefetch = 0 : i64, scratch_operands = 0 : i64, tpu.core_type = #tpu.core_type<tc>, window_params = [{transform_indices = @transform_0, window_bounds = array<i64: 1, 8, 32>}, {transform_indices = @transform_1, window_bounds = array<i64: 1, 1, 8>}, {pipeline_mode = #tpu.pipeline_mode<synchronous>, transform_indices = @transform_2, window_bounds = array<i64: 32, 32>}, {pipeline_mode = #tpu.pipeline_mode<synchronous>, transform_indices = @transform_3, window_bounds = array<i64: 1, 32>}, {pipeline_mode = #tpu.pipeline_mode<synchronous>, transform_indices = @transform_4, window_bounds = array<i64: 32, 32>}, {pipeline_mode = #tpu.pipeline_mode<synchronous>, transform_indices = @transform_5, window_bounds = array<i64: 1, 32>}, {pipeline_mode = #tpu.pipeline_mode<synchronous>, transform_indices = @transform_6, window_bounds = array<i64: 32, 32>}, {pipeline_mode = #tpu.pipeline_mode<synchronous>, transform_indices = @transform_7, window_bounds = array<i64: 1, 32>}, {pipeline_mode = #tpu.pipeline_mode<synchronous>, transform_indices = @transform_8, window_bounds = array<i64: 1, 32>}, {transform_indices = @transform_9, window_bounds = array<i64: 1, 8, 32>}]} {
    %c8_i32 = arith.constant 8 : i32
    %0 = arith.muli %arg1, %c8_i32 : i32
    %1 = tpu.assume_multiple %0, 8 : i32
    %c0 = arith.constant 0 : index
    %c0_0 = arith.constant 0 : index
    %c0_1 = arith.constant 0 : index
    %2 = vector.load %arg2[%c0, %c0_0, %c0_1] : memref<1x8x32xf32, #tpu.memory_space<vmem>>, vector<1x8x32xf32>
    %3 = vector.shape_cast %2 : vector<1x8x32xf32> to vector<8x32xf32>
    %c0_2 = arith.constant 0 : index
    %4 = arith.index_cast %1 : i32 to index
    %c0_3 = arith.constant 0 : index
    %5 = vector.load %arg2[%c0_2, %4, %c0_3] : memref<1x8x32xf32, #tpu.memory_space<vmem>>, vector<1x8x32xf32>
    %6 = vector.shape_cast %5 : vector<1x8x32xf32> to vector<8x32xf32>
    %7 = arith.truncf %6 : vector<8x32xf32> to vector<8x32xbf16>
    %c0_4 = arith.constant 0 : index
    %c0_5 = arith.constant 0 : index
    %8 = vector.load %arg4[%c0_4, %c0_5] : memref<32x32xbf16, #tpu.memory_space<vmem>>, vector<32x32xbf16>
    %cst = arith.constant dense<0.000000e+00> : vector<8x32xf32>
    %9 = tpu.matmul %7, %8, %cst {dimension_numbers = #tpu.dot_dimension_numbers<[1], [0], [0], [1], [0, 0, 1, 1], [], []>} : vector<8x32xbf16>, vector<32x32xbf16>, vector<8x32xf32> -> vector<8x32xf32>
    %c0_6 = arith.constant 0 : index
    %c0_7 = arith.constant 0 : index
    %10 = vector.load %arg5[%c0_6, %c0_7] : memref<1x32xf32, #tpu.memory_space<vmem>>, vector<1x32xf32>
    %11 = vector.broadcast %10 : vector<1x32xf32> to vector<8x32xf32>
    %12 = arith.addf %9, %11 : vector<8x32xf32>
    %13 = arith.truncf %3 : vector<8x32xf32> to vector<8x32xbf16>
    %c0_8 = arith.constant 0 : index
    %c0_9 = arith.constant 0 : index
    %14 = vector.load %arg6[%c0_8, %c0_9] : memref<32x32xbf16, #tpu.memory_space<vmem>>, vector<32x32xbf16>
    %cst_10 = arith.constant dense<0.000000e+00> : vector<8x32xf32>
    %15 = tpu.matmul %13, %14, %cst_10 {dimension_numbers = #tpu.dot_dimension_numbers<[1], [0], [0], [1], [0, 0, 1, 1], [], []>} : vector<8x32xbf16>, vector<32x32xbf16>, vector<8x32xf32> -> vector<8x32xf32>
    %c0_11 = arith.constant 0 : index
    %c0_12 = arith.constant 0 : index
    %16 = vector.load %arg7[%c0_11, %c0_12] : memref<1x32xf32, #tpu.memory_space<vmem>>, vector<1x32xf32>
    %17 = vector.broadcast %16 : vector<1x32xf32> to vector<8x32xf32>
    %18 = arith.addf %15, %17 : vector<8x32xf32>
    %19 = arith.truncf %12 : vector<8x32xf32> to vector<8x32xbf16>
    %20 = arith.truncf %18 : vector<8x32xf32> to vector<8x32xbf16>
    %c0_13 = arith.constant 0 : index
    %c0_14 = arith.constant 0 : index
    %c0_15 = arith.constant 0 : index
    %21 = vector.load %arg3[%c0_13, %c0_14, %c0_15] : memref<1x1x8xf32, #tpu.memory_space<vmem>>, vector<1x1x8xf32>
    %22 = vector.shape_cast %21 : vector<1x1x8xf32> to vector<1x8xf32>
    %23 = vector.extract_strided_slice %20 {offsets = [0, 0], sizes = [8, 8], strides = [1, 1]} : vector<8x32xbf16> to vector<8x8xbf16>
    %24 = vector.extract_strided_slice %20 {offsets = [0, 16], sizes = [8, 8], strides = [1, 1]} : vector<8x32xbf16> to vector<8x8xbf16>
    %25 = vector.extract_strided_slice %19 {offsets = [0, 0], sizes = [8, 8], strides = [1, 1]} : vector<8x32xbf16> to vector<8x8xbf16>
    %cst_16 = arith.constant dense<0.000000e+00> : vector<8x8xf32>
    %26 = tpu.matmul %25, %23, %cst_16 {dimension_numbers = #tpu.dot_dimension_numbers<[1], [1], [0], [0], [0, 0, 1, 0], [], []>} : vector<8x8xbf16>, vector<8x8xbf16>, vector<8x8xf32> -> vector<8x8xf32>
    %cst_17 = arith.constant 0.353553385 : f32
    %27 = vector.broadcast %cst_17 : f32 to vector<8x8xf32>
    %28 = arith.mulf %26, %27 : vector<8x8xf32>
    %29 = vector.broadcast %22 : vector<1x8xf32> to vector<8x8xf32>
    %30 = arith.addf %28, %29 : vector<8x8xf32>
    %cst_18 = arith.constant dense<0xFF800000> : vector<8xf32>
    %31 = vector.multi_reduction <maximumf>, %30, %cst_18 [1] : vector<8x8xf32> to vector<8xf32>
    %32 = vector.shape_cast %31 : vector<8xf32> to vector<8x1xf32>
    %33 = vector.broadcast %32 : vector<8x1xf32> to vector<8x8xf32>
    %34 = arith.subf %30, %33 : vector<8x8xf32>
    %35 = math.exp %34 : vector<8x8xf32>
    %cst_19 = arith.constant dense<0.000000e+00> : vector<8xf32>
    %36 = vector.multi_reduction <add>, %35, %cst_19 [1] : vector<8x8xf32> to vector<8xf32>
    %37 = vector.shape_cast %36 : vector<8xf32> to vector<8x1xf32>
    %38 = tpu.reciprocal %37 {approx = true} : vector<8x1xf32> -> vector<8x1xf32>
    %39 = vector.broadcast %38 : vector<8x1xf32> to vector<8x8xf32>
    %40 = arith.mulf %35, %39 : vector<8x8xf32>
    %41 = arith.truncf %40 : vector<8x8xf32> to vector<8x8xbf16>
    %cst_20 = arith.constant dense<0.000000e+00> : vector<8x8xf32>
    %42 = tpu.matmul %41, %24, %cst_20 {dimension_numbers = #tpu.dot_dimension_numbers<[1], [0], [0], [1], [0, 0, 1, 1], [], []>} : vector<8x8xbf16>, vector<8x8xbf16>, vector<8x8xf32> -> vector<8x8xf32>
    %43 = vector.extract_strided_slice %19 {offsets = [0, 8], sizes = [8, 8], strides = [1, 1]} : vector<8x32xbf16> to vector<8x8xbf16>
    %cst_21 = arith.constant dense<0.000000e+00> : vector<8x8xf32>
    %44 = tpu.matmul %43, %23, %cst_21 {dimension_numbers = #tpu.dot_dimension_numbers<[1], [1], [0], [0], [0, 0, 1, 0], [], []>} : vector<8x8xbf16>, vector<8x8xbf16>, vector<8x8xf32> -> vector<8x8xf32>
    %cst_22 = arith.constant 0.353553385 : f32
    %45 = vector.broadcast %cst_22 : f32 to vector<8x8xf32>
    %46 = arith.mulf %44, %45 : vector<8x8xf32>
    %47 = vector.broadcast %22 : vector<1x8xf32> to vector<8x8xf32>
    %48 = arith.addf %46, %47 : vector<8x8xf32>
    %cst_23 = arith.constant dense<0xFF800000> : vector<8xf32>
    %49 = vector.multi_reduction <maximumf>, %48, %cst_23 [1] : vector<8x8xf32> to vector<8xf32>
    %50 = vector.shape_cast %49 : vector<8xf32> to vector<8x1xf32>
    %51 = vector.broadcast %50 : vector<8x1xf32> to vector<8x8xf32>
    %52 = arith.subf %48, %51 : vector<8x8xf32>
    %53 = math.exp %52 : vector<8x8xf32>
    %cst_24 = arith.constant dense<0.000000e+00> : vector<8xf32>
    %54 = vector.multi_reduction <add>, %53, %cst_24 [1] : vector<8x8xf32> to vector<8xf32>
    %55 = vector.shape_cast %54 : vector<8xf32> to vector<8x1xf32>
    %56 = tpu.reciprocal %55 {approx = true} : vector<8x1xf32> -> vector<8x1xf32>
    %57 = vector.broadcast %56 : vector<8x1xf32> to vector<8x8xf32>
    %58 = arith.mulf %53, %57 : vector<8x8xf32>
    %59 = arith.truncf %58 : vector<8x8xf32> to vector<8x8xbf16>
    %cst_25 = arith.constant dense<0.000000e+00> : vector<8x8xf32>
    %60 = tpu.matmul %59, %24, %cst_25 {dimension_numbers = #tpu.dot_dimension_numbers<[1], [0], [0], [1], [0, 0, 1, 1], [], []>} : vector<8x8xbf16>, vector<8x8xbf16>, vector<8x8xf32> -> vector<8x8xf32>
    %61 = vector.extract_strided_slice %20 {offsets = [0, 8], sizes = [8, 8], strides = [1, 1]} : vector<8x32xbf16> to vector<8x8xbf16>
    %62 = vector.extract_strided_slice %20 {offsets = [0, 24], sizes = [8, 8], strides = [1, 1]} : vector<8x32xbf16> to vector<8x8xbf16>
    %63 = vector.extract_strided_slice %19 {offsets = [0, 16], sizes = [8, 8], strides = [1, 1]} : vector<8x32xbf16> to vector<8x8xbf16>
    %cst_26 = arith.constant dense<0.000000e+00> : vector<8x8xf32>
    %64 = tpu.matmul %63, %61, %cst_26 {dimension_numbers = #tpu.dot_dimension_numbers<[1], [1], [0], [0], [0, 0, 1, 0], [], []>} : vector<8x8xbf16>, vector<8x8xbf16>, vector<8x8xf32> -> vector<8x8xf32>
    %cst_27 = arith.constant 0.353553385 : f32
    %65 = vector.broadcast %cst_27 : f32 to vector<8x8xf32>
    %66 = arith.mulf %64, %65 : vector<8x8xf32>
    %67 = vector.broadcast %22 : vector<1x8xf32> to vector<8x8xf32>
    %68 = arith.addf %66, %67 : vector<8x8xf32>
    %cst_28 = arith.constant dense<0xFF800000> : vector<8xf32>
    %69 = vector.multi_reduction <maximumf>, %68, %cst_28 [1] : vector<8x8xf32> to vector<8xf32>
    %70 = vector.shape_cast %69 : vector<8xf32> to vector<8x1xf32>
    %71 = vector.broadcast %70 : vector<8x1xf32> to vector<8x8xf32>
    %72 = arith.subf %68, %71 : vector<8x8xf32>
    %73 = math.exp %72 : vector<8x8xf32>
    %cst_29 = arith.constant dense<0.000000e+00> : vector<8xf32>
    %74 = vector.multi_reduction <add>, %73, %cst_29 [1] : vector<8x8xf32> to vector<8xf32>
    %75 = vector.shape_cast %74 : vector<8xf32> to vector<8x1xf32>
    %76 = tpu.reciprocal %75 {approx = true} : vector<8x1xf32> -> vector<8x1xf32>
    %77 = vector.broadcast %76 : vector<8x1xf32> to vector<8x8xf32>
    %78 = arith.mulf %73, %77 : vector<8x8xf32>
    %79 = arith.truncf %78 : vector<8x8xf32> to vector<8x8xbf16>
    %cst_30 = arith.constant dense<0.000000e+00> : vector<8x8xf32>
    %80 = tpu.matmul %79, %62, %cst_30 {dimension_numbers = #tpu.dot_dimension_numbers<[1], [0], [0], [1], [0, 0, 1, 1], [], []>} : vector<8x8xbf16>, vector<8x8xbf16>, vector<8x8xf32> -> vector<8x8xf32>
    %81 = vector.extract_strided_slice %19 {offsets = [0, 24], sizes = [8, 8], strides = [1, 1]} : vector<8x32xbf16> to vector<8x8xbf16>
    %cst_31 = arith.constant dense<0.000000e+00> : vector<8x8xf32>
    %82 = tpu.matmul %81, %61, %cst_31 {dimension_numbers = #tpu.dot_dimension_numbers<[1], [1], [0], [0], [0, 0, 1, 0], [], []>} : vector<8x8xbf16>, vector<8x8xbf16>, vector<8x8xf32> -> vector<8x8xf32>
    %cst_32 = arith.constant 0.353553385 : f32
    %83 = vector.broadcast %cst_32 : f32 to vector<8x8xf32>
    %84 = arith.mulf %82, %83 : vector<8x8xf32>
    %85 = vector.broadcast %22 : vector<1x8xf32> to vector<8x8xf32>
    %86 = arith.addf %84, %85 : vector<8x8xf32>
    %cst_33 = arith.constant dense<0xFF800000> : vector<8xf32>
    %87 = vector.multi_reduction <maximumf>, %86, %cst_33 [1] : vector<8x8xf32> to vector<8xf32>
    %88 = vector.shape_cast %87 : vector<8xf32> to vector<8x1xf32>
    %89 = vector.broadcast %88 : vector<8x1xf32> to vector<8x8xf32>
    %90 = arith.subf %86, %89 : vector<8x8xf32>
    %91 = math.exp %90 : vector<8x8xf32>
    %cst_34 = arith.constant dense<0.000000e+00> : vector<8xf32>
    %92 = vector.multi_reduction <add>, %91, %cst_34 [1] : vector<8x8xf32> to vector<8xf32>
    %93 = vector.shape_cast %92 : vector<8xf32> to vector<8x1xf32>
    %94 = tpu.reciprocal %93 {approx = true} : vector<8x1xf32> -> vector<8x1xf32>
    %95 = vector.broadcast %94 : vector<8x1xf32> to vector<8x8xf32>
    %96 = arith.mulf %91, %95 : vector<8x8xf32>
    %97 = arith.truncf %96 : vector<8x8xf32> to vector<8x8xbf16>
    %cst_35 = arith.constant dense<0.000000e+00> : vector<8x8xf32>
    %98 = tpu.matmul %97, %62, %cst_35 {dimension_numbers = #tpu.dot_dimension_numbers<[1], [0], [0], [1], [0, 0, 1, 1], [], []>} : vector<8x8xbf16>, vector<8x8xbf16>, vector<8x8xf32> -> vector<8x8xf32>
    %99 = tpu.concatenate %42, %60, %80, %98 in 1 : vector<8x8xf32>, vector<8x8xf32>, vector<8x8xf32>, vector<8x8xf32> -> vector<8x32xf32>
    %100 = arith.truncf %99 : vector<8x32xf32> to vector<8x32xbf16>
    %c0_36 = arith.constant 0 : index
    %c0_37 = arith.constant 0 : index
    %101 = vector.load %arg8[%c0_36, %c0_37] : memref<32x32xbf16, #tpu.memory_space<vmem>>, vector<32x32xbf16>
    %cst_38 = arith.constant dense<0.000000e+00> : vector<8x32xf32>
    %102 = tpu.matmul %100, %101, %cst_38 {dimension_numbers = #tpu.dot_dimension_numbers<[1], [0], [0], [1], [0, 0, 1, 1], [], []>} : vector<8x32xbf16>, vector<32x32xbf16>, vector<8x32xf32> -> vector<8x32xf32>
    %c0_39 = arith.constant 0 : index
    %c0_40 = arith.constant 0 : index
    %103 = vector.load %arg9[%c0_39, %c0_40] : memref<1x32xf32, #tpu.memory_space<vmem>>, vector<1x32xf32>
    %104 = vector.broadcast %103 : vector<1x32xf32> to vector<8x32xf32>
    %105 = arith.addf %102, %104 : vector<8x32xf32>
    %106 = arith.addf %6, %105 : vector<8x32xf32>
    %107 = arith.mulf %106, %106 : vector<8x32xf32>
    %cst_41 = arith.constant dense<0.000000e+00> : vector<8xf32>
    %108 = vector.multi_reduction <add>, %107, %cst_41 [1] : vector<8x32xf32> to vector<8xf32>
    %109 = vector.shape_cast %108 : vector<8xf32> to vector<8x1xf32>
    %cst_42 = arith.constant 3.200000e+01 : f32
    %110 = vector.broadcast %cst_42 : f32 to vector<8x1xf32>
    %111 = arith.divf %109, %110 : vector<8x1xf32>
    %cst_43 = arith.constant 9.99999997E-7 : f32
    %112 = vector.broadcast %cst_43 : f32 to vector<8x1xf32>
    %113 = arith.addf %111, %112 : vector<8x1xf32>
    %114 = math.rsqrt %113 : vector<8x1xf32>
    %115 = vector.broadcast %114 : vector<8x1xf32> to vector<8x32xf32>
    %116 = arith.mulf %106, %115 : vector<8x32xf32>
    %c0_44 = arith.constant 0 : index
    %c0_45 = arith.constant 0 : index
    %117 = vector.load %arg10[%c0_44, %c0_45] : memref<1x32xf32, #tpu.memory_space<vmem>>, vector<1x32xf32>
    %118 = vector.broadcast %117 : vector<1x32xf32> to vector<8x32xf32>
    %119 = arith.mulf %116, %118 : vector<8x32xf32>
    %c0_46 = arith.constant 0 : index
    %c0_47 = arith.constant 0 : index
    %c0_48 = arith.constant 0 : index
    %120 = vector.load %arg11[%c0_46, %c0_47, %c0_48] : memref<1x8x32xf32, #tpu.memory_space<vmem>>, vector<1x8x32xf32>
    %121 = vector.shape_cast %120 : vector<1x8x32xf32> to vector<8x32xf32>
    %122 = vector.shape_cast %119 : vector<8x32xf32> to vector<1x8x32xf32>
    tpu.vector_store %arg11[%c0_46, %c0_47, %c0_48], %122 {strides = array<i32>} : memref<1x8x32xf32, #tpu.memory_space<vmem>>, vector<1x8x32xf32>,
    return
  }
  func.func @transform_0(%arg0: i32, %arg1: i32) -> (i32, i32, i32) {
    %c0_i32 = arith.constant 0 : i32
    %c0_i32_0 = arith.constant 0 : i32
    %c0_i32_1 = arith.constant 0 : i32
    return %arg0, %c0_i32, %c0_i32_0 : i32, i32, i32
  }
  func.func @transform_1(%arg0: i32, %arg1: i32) -> (i32, i32, i32) {
    %c0_i32 = arith.constant 0 : i32
    %c0_i32_0 = arith.constant 0 : i32
    %c0_i32_1 = arith.constant 0 : i32
    return %arg0, %c0_i32, %c0_i32_0 : i32, i32, i32
  }
  func.func @transform_2(%arg0: i32, %arg1: i32) -> (i32, i32) {
    %c0_i32 = arith.constant 0 : i32
    %c0_i32_0 = arith.constant 0 : i32
    %c0_i32_1 = arith.constant 0 : i32
    return %c0_i32, %c0_i32_0 : i32, i32
  }
  func.func @transform_3(%arg0: i32, %arg1: i32) -> (i32, i32) {
    %c0_i32 = arith.constant 0 : i32
    %c0_i32_0 = arith.constant 0 : i32
    %c0_i32_1 = arith.constant 0 : i32
    return %c0_i32, %c0_i32_0 : i32, i32
  }
  func.func @transform_4(%arg0: i32, %arg1: i32) -> (i32, i32) {
    %c0_i32 = arith.constant 0 : i32
    %c0_i32_0 = arith.constant 0 : i32
    %c0_i32_1 = arith.constant 0 : i32
    return %c0_i32, %c0_i32_0 : i32, i32
  }
  func.func @transform_5(%arg0: i32, %arg1: i32) -> (i32, i32) {
    %c0_i32 = arith.constant 0 : i32
    %c0_i32_0 = arith.constant 0 : i32
    %c0_i32_1 = arith.constant 0 : i32
    return %c0_i32, %c0_i32_0 : i32, i32
  }
  func.func @transform_6(%arg0: i32, %arg1: i32) -> (i32, i32) {
    %c0_i32 = arith.constant 0 : i32
    %c0_i32_0 = arith.constant 0 : i32
    %c0_i32_1 = arith.constant 0 : i32
    return %c0_i32, %c0_i32_0 : i32, i32
  }
  func.func @transform_7(%arg0: i32, %arg1: i32) -> (i32, i32) {
    %c0_i32 = arith.constant 0 : i32
    %c0_i32_0 = arith.constant 0 : i32
    %c0_i32_1 = arith.constant 0 : i32
    return %c0_i32, %c0_i32_0 : i32, i32
  }
  func.func @transform_8(%arg0: i32, %arg1: i32) -> (i32, i32) {
    %c0_i32 = arith.constant 0 : i32
    %c0_i32_0 = arith.constant 0 : i32
    %c0_i32_1 = arith.constant 0 : i32
    return %c0_i32, %c0_i32_0 : i32, i32
  }
  func.func @transform_9(%arg0: i32, %arg1: i32) -> (i32, i32, i32) {
    %c0_i32 = arith.constant 0 : i32
    %c0_i32_0 = arith.constant 0 : i32
    return %arg0, %arg1, %c0_i32 : i32, i32, i32
  }
}

</mosaic_0001>

<bundles_post_ra>
// kernel: tpu_custom_call.1
= control target key start
LH: loop header
LB: loop body
LE: loop exit
PB: predicated region body
PF: predicated region fallthrough
CT: control target
= control target key end

     0   :  { %s2054_s0 = inlined_call_operand.hbm [shape: f32[2,8,32], index: 0, kind: input, shape index: {}]   ;;  %s2055_s1 = inlined_call_operand.vmem [shape: f32[2,1,8], index: 1, kind: input, shape index: {}]   ;;  %s2056_s2 = inlined_call_operand.hbm [shape: bf16[32,32], index: 2, kind: input, shape index: {}]   ;;  %s2057_s3 = inlined_call_operand.vmem [shape: f32[1,32], index: 3, kind: input, shape index: {}]   ;;  %s2058_s4 = inlined_call_operand.hbm [shape: bf16[32,32], index: 4, kind: input, shape index: {}]   ;;  %s2059_s5 = inlined_call_operand.vmem [shape: f32[1,32], index: 5, kind: input, shape index: {}]   ;;  %s2060_s6 = inlined_call_operand.vmem [shape: bf16[32,32], index: 6, kind: input, shape index: {}]   ;;  %s2061_s7 = inlined_call_operand.vmem [shape: f32[1,32], index: 7, kind: input, shape index: {}]   ;;  %s2062_s8 = inlined_call_operand.vmem [shape: f32[1,32], index: 8, kind: input, shape index: {}]   ;;  %s2063_s9 = inlined_call_operand.hbm [shape: f32[2,8,32], index: 9, kind: output, shape index: {}]  }
   0x1   :  { %2071 = sst [smem:[#allocation14_spill]] %s2062_s8 }
   0x2   :  { %2072 = sst [smem:[#allocation15_spill]] %s2063_s9 }
   0x3   :  { %14 = vsyncpa [#allocation3], 0 }
   0x4   :  { %16 = vsyncpa [#allocation3 + $0x1], 0 }
   0x5   :  { %17 = vsyncpa [#allocation6], 0 }
   0x6   :  { %18 = vsyncpa [#allocation4], 0 }
   0x7   :  { %20 = vsyncpa [#allocation4 + $0x1], 0  ;;  %s1700_s30 = smov 0   ;;  %s1702_s10 = smov 0  }
   0x8   :  { %s1704_s11 = smov 0   ;;  %s1706_s12 = smov 0  }
   0x9   :  { %s1708_s13 = smov 0   ;;  %s1710_s14 = smov 0  }
   0xa LB: > { %2073 = sst [smem:[#allocation12_spill]] %s1614_s30  ;;  %s1209_s15 = sadd.s32 4294967295, %s1634_s14   ;;  %s1634_s14 = sphi %s1710_s14, %s26_s14   ;;  %s1630_s13 = sphi %s1708_s13, %s2097_s13   ;;  %s1626_s12 = sphi %s1706_s12, %s2096_s12   ;;  %s1622_s11 = sphi %s1704_s11, %s2095_s11   ;;  %s1618_s10 = sphi %s1702_s10, %s2094_s10   ;;  %s1614_s30 = sphi %s1700_s30, %s2093_s30  }
   0xb   : > { %s1210_s16 = sadd.s32 4294967294, %s1634_s14   ;;  %p58_p0 = scmp.ne.s32.totalorder %s1618_s10, %s1614_s30 }
   0xc   : > { %p1734_p1 = scmp.eq.s32.totalorder %s1209_s15, 0  ;;  %p1738_p2 = scmp.eq.s32.totalorder %s1209_s15, 1 }
   0xd   : > { %p263_p3 = scmp.eq.s32.totalorder %s1210_s16, 1  ;;  %p1211_p5 = scmp.ge.s32.totalorder %s1634_s14, 1 }
   0xe   : > { %s2074_s17 = scalar_select %p1734_p1, 1, 0 }
   0xf   : > { %p1744_p4 = por %p1734_p1, %p58_p0  ;;  %p1749_p6 = por %p263_p3, %p58_p0 }
  0x10   : > { %p270_p7 = scmp.lt.s32.totalorder %s1634_s14, 3  ;;  %s1636_s22 = smov [#allocation5]  }
  0x11   : > { %s2076_s19 = scalar_select %p1744_p4, 1, 0 }
  0x12   : > { %s2077_s20 = scalar_select %p1749_p6, 1, 0 }
  0x13   : > { %p1754_p8 = pnand %p1211_p5, %p270_p7  ;;  %s282_s23 = sshll.u32 %s1636_s22, 4  ;;  %s1758_s23 = int_to_ptr.vmem [resolvable:$true] %s282_s23 }
  0x14   : > { %2078 = sst [smem:[#allocation13_spill]] %s2077_s20  ;;  %s1637_s25 = smov [#allocation7]  }
  0x15   : > { %p1357_p9 = pneg %p1754_p8  ;;  %s298_s26 = sshll.u32 %s1637_s25, 4  ;;  %s1769_s26 = int_to_ptr.vmem [resolvable:$true] %s298_s26 }
  0x16   : > { %s1462_s29 = scalar_lea.hbm %s2056_s2, 256 }
  0x17   : > { %p1765_p11 = pnand %p1357_p9, %p1734_p1  ;;  %p1463_p12 = scmp.ne.s32.totalorder %s2056_s2, %s1462_s29 }
  0x18   : > { %p1469_p5 = scmp.lt.u32.totalorder %s1462_s29, %s2056_s2 }
  0x19   : > { %p1464_p13 = pneg %p1765_p11 }
  0x1b   : > { %p1465_p0 = pnand %p1464_p13, %p1463_p12 }
  0x1d   : > { %p1466_p3 = pneg %p1465_p0 }
  0x1f   : > { %p1471_p7 = pnand %p1469_p5, %p1466_p3 }
  0x21   : > { %1474 = shalt.err (!%p1471_p7)
}
  0x22   : > { %s1475_s25 = scalar_lea.vmem %s1758_s23, 256  ;;  %p1483_p1 = scmp.lt.s32.totalorder %s1758_s23, %s1758_s23 }
  0x23   : > { %p1476_p9 = scmp.ne.s32.totalorder %s1758_s23, %s1475_s25  ;;  %p1484_p12 = scmp.lt.s32.totalorder %s1475_s25, %s1475_s25 }
  0x25   : > { %p1478_p10 = pnand %p1476_p9, %p1464_p13  ;;  %p1485_p0 = por %p1484_p12, %p1483_p1 }
  0x27   : > { %p1479_p6 = pneg %p1478_p10 }
  0x29   : > { %p1486_p4 = pnand %p1485_p0, %p1479_p6 }
  0x2b   : > { %1489 = shalt.err (!%p1486_p4)
}
  0x2c   : > { %s1638_s20 = smov 64   ;;  %s1639_s27 = smov 4  }
  0x2d   : > { %1360 = dma.hbm_to_vmem [thread:$0]  (!%p1765_p11), %s2056_s2, 256, %s1758_s23, [#allocation6], %s1638_s20, %s1638_s20, %s1639_s27  }
  0x2e   : > { %s1490_s22 = scalar_lea.hbm %s2058_s4, 256 }
  0x2f   : > { %p1491_p1 = scmp.ne.s32.totalorder %s2058_s4, %s1490_s22  ;;  %p1497_p10 = scmp.lt.u32.totalorder %s1490_s22, %s2058_s4 }
  0x31   : > { %p1493_p4 = pnand %p1491_p1, %p1464_p13 }
  0x33   : > { %p1494_p6 = pneg %p1493_p4 }
  0x35   : > { %p1499_p3 = pnand %p1497_p10, %p1494_p6 }
  0x37   : > { %1502 = shalt.err (!%p1499_p3)
}
  0x38   : > { %s1503_s23 = scalar_lea.vmem %s1769_s26, 256  ;;  %p1511_p12 = scmp.lt.s32.totalorder %s1769_s26, %s1769_s26 }
  0x39   : > { %p1504_p5 = scmp.ne.s32.totalorder %s1769_s26, %s1503_s23  ;;  %p1512_p0 = scmp.lt.s32.totalorder %s1503_s23, %s1503_s23 }
  0x3b   : > { %p1506_p7 = pnand %p1504_p5, %p1464_p13  ;;  %p1513_p1 = por %p1512_p0, %p1511_p12 }
  0x3d   : > { %p1507_p9 = pneg %p1506_p7 }
  0x3f   : > { %p1514_p4 = pnand %p1513_p1, %p1507_p9 }
  0x41   : > { %1517 = shalt.err (!%p1514_p4)
}
  0x42   : > { %1363 = dma.hbm_to_vmem [thread:$0]  (!%p1765_p11), %s2058_s4, 256, %s1769_s26, [#allocation6], %s1638_s20, %s1638_s20, %s1639_s27  }
  0x43   : > { %s38_s30 = sadd.s32 1, %s1630_s13  ;;  %s45_s28 = sadd.s32 1, %s1622_s11 }
  0x44   : > { %p40_p13 = scmp.ge.s32.totalorder %s38_s30, 2  ;;  %p52_p6 = scmp.ne.s32.totalorder %s1622_s11, %s1618_s10 }
  0x45   : > { %p53_p10 = scmp.eq.s32.totalorder %s1634_s14, 0  ;;  %p1374_p3 = scmp.lt.s32.totalorder %s1634_s14, 2 }
  0x46   : > { %s2099_s30 = smov (%p40_p13, %s38_s30), 0  ;;  %p1833_p7 = por %p1738_p2, %p52_p6 }
  0x47   : > { %p54_p5 = por %p53_p10, %p52_p6  ;;  %s42_s29 = ssub.s32 %s1630_s13, %s2099_s30 }
  0x48   : > { %s2081_s24 = scalar_select %p1833_p7, 1, 0 }
  0x49   : > { %s324_s15 = sand.u32 1, %s1622_s11   ;;  %p43_p9 = scmp.eq.s32.totalorder %s42_s29, 0 }
  0x4a   : > { %s1215_s26 = sshll.u32 %s324_s15, 3  ;;  %s1216_s20 = sshll.u32 %s1630_s13, 7 }
  0x4b   : > { %s1842_s27 = scalar_select %p43_p9, %s1622_s11, %s45_s28  }
  0x4c   : > { %s1847_s25 = scalar_lea.hbm %s2054_s0, %s1216_s20  ;;  %s328_s18 = scalar_lea.vmem [#allocation2], %s1215_s26 }
  0x4d   : > { %s335_s23 = sshll.u32 %s328_s18, 4  ;;  %p1851_p2 = pnand %p1374_p3, %p54_p5  ;;  %s1855_s23 = int_to_ptr.vmem [resolvable:$true] %s335_s23 }
  0x4e   : > { %s325_s9 = scalar_lea.sflag [#allocation3], %s324_s15  ;;  %s1518_s28 = scalar_lea.hbm %s1847_s25, 128 }
  0x4f   : > { %p1519_p11 = scmp.ne.s32.totalorder %s1847_s25, %s1518_s28  ;;  %p1520_p12 = pneg %p1851_p2 }
  0x50   : > { %s1523_s20 = scalar_lea.hbm %s2054_s0, 256  ;;  %p1524_p4 = scmp.lt.u32.totalorder %s1847_s25, %s2054_s0 }
  0x51   : > { %p1521_p0 = pnand %p1520_p12, %p1519_p11  ;;  %p1525_p13 = scmp.lt.u32.totalorder %s1523_s20, %s1518_s28 }
  0x52   : > { %p1527_p10 = scmp.lt.u32.totalorder %s1518_s28, %s1847_s25 }
  0x53   : > { %p1522_p1 = pneg %p1521_p0  ;;  %p1526_p6 = por %p1525_p13, %p1524_p4 }
  0x55   : > { %p1528_p3 = por %p1527_p10, %p1526_p6 }
  0x57   : > { %p1529_p5 = pnand %p1528_p3, %p1522_p1 }
  0x59   : > { %1532 = shalt.err (!%p1529_p5)
}
  0x5a   : > { %s1533_s15 = scalar_lea.vmem %s1855_s23, 128  ;;  %s1640_s18 = smov [#allocation2]  }
  0x5b   : > { %p1534_p9 = scmp.ne.s32.totalorder %s1855_s23, %s1533_s15  ;;  %s1538_s29 = sshll.u32 %s1640_s18, 4  ;;  %s1539_s29 = int_to_ptr.vmem [resolvable:$false] %s1538_s29 }
  0x5c   : > { %s1540_s26 = scalar_lea.vmem %s1539_s29, 256  ;;  %p1541_p7 = scmp.lt.s32.totalorder %s1855_s23, %s1539_s29 }
  0x5d   : > { %p1536_p11 = pnand %p1534_p9, %p1520_p12  ;;  %p1542_p4 = scmp.lt.s32.totalorder %s1540_s26, %s1533_s15 }
  0x5f   : > { %p1537_p0 = pneg %p1536_p11  ;;  %p1543_p13 = por %p1542_p4, %p1541_p7 }
  0x61   : > { %p1544_p6 = pnand %p1543_p13, %p1537_p0 }
  0x63   : > { %1547 = shalt.err (!%p1544_p6)
}
  0x64   : > { %1367 = dma.hbm_to_vmem [thread:$0]  (!%p1851_p2), %s1847_s25, 128, %s1855_s23, %s325_s9  }
  0x65   : > { %350 = sbr.rel (%p1754_p8) target bundleno = 1738 (0x6ca), region = 56  ;;  %s1885_s28 = sand.u32 (!%p1754_p8), 1, %s1618_s10  }
  0x66   : > { %s1218_s20 = sshll.u32 (!%p1754_p8), %s1885_s28, 3  ;;  %s353_s16 = scalar_lea.sflag (!%p1754_p8), [#allocation3], %s1885_s28 }
  0x67   : > { %s356_s22 = scalar_lea.vmem (!%p1754_p8), [#allocation2], %s1218_s20  ;;  %p2083_p7 = scmp.ne.s32.totalorder (!%p1754_p8), %s2076_s19, 0 }
  0x6c   : > { %1601 = dma.done.wait (%p2083_p7), %s353_s16, 128  }
  0x6d   : > { %1603 = vsyncadd (%p2083_p7), %s353_s16, 4294967168  ;;  %p2084_p2 = scmp.ne.s32.totalorder %s2074_s17, 0 }
  0x6f   : > { %1605 = dma.done.wait (%p2084_p2), [#allocation6], 512  }
  0x70   : > { %1607 = vsyncadd (%p2084_p2), [#allocation6], 4294966784  ;;  %v1641_v0 = vmov 0.0   ;;  %vm1642_vm0 = vmmov 0   ;;  %v1438_v1 = vld [vmem:[#allocation5] sm:$0xff]   ;;  %v1439_v2 = vld [vmem:[#allocation7] sm:$0xff]  }
  0x71   : > { %1273 = vmatprep.subr.bf16.mxu0 %v1641_v0  ;;  %1281 = vmatprep.subr.bf16.mxu1 %v1641_v0  ;;  %v1440_v3 = vld [vmem:[#allocation5 + $0x8] sm:$0xff]   ;;  %v1441_v4 = vld [vmem:[#allocation7 + $0x8] sm:$0xff]   ;;  %vm434_vm1 = vcmask 261120   ;;  %v1222_v7 = vld [vmem:[%s2057_s3] ss:$0 sm:$0xff]  ;;  %vm548_vm2 = vcmask 64512  }
  0x72   : > { %1277 = vmatprep.mubr.msk.bf16.mxu0 %vm1642_vm0, %v1641_v0  ;;  %1285 = vmatprep.mubr.msk.bf16.mxu1 %vm1642_vm0, %v1641_v0  ;;  %v1907_v5 = vld [vmem:[%s356_s22] sm:$0xff]  ;;  %s1643_s23 = smov 112   ;;  %s1644_s8 = smov 120   ;;  %vm621_vm3 = vcmask 1043456   ;;  %vm995_vm4 = vcmask 130048   ;;  %vm997_vm5 = vcmask 195584  }
  0x73   : > { %1274 = vmatpush3.bf16.msra.mxu0 %v1438_v1  ;;  %1282 = vmatpush3.bf16.msra.mxu1 %v1439_v2  ;;  %v410_v6 = vpack.c.bf16 %v1907_v5, %v1907_v5  ;;  %v1226_v8 = vld [vmem:[%s2059_s5] ss:$0 sm:$0xff]  ;;  %s1645_s9 = smov 104   ;;  %p402_p8 = scmp.lt.s32.totalorder %s1626_s12, 1 }
  0x74   : > { %1275 = vmatprep.subr.bf16.mxu0 %v1641_v0  ;;  %1283 = vmatprep.subr.bf16.mxu1 %v1641_v0  ;;  %s1646_s17 = smov 8   ;;  %s1647_s25 = smov 16  }
  0x75   : > { %s403_s15 = scalar_select %p402_p8, %s1626_s12, 1 }
  0x76   : > { %s2085_s29 = sld [smem:[#allocation14_spill]]  ;;  %s401_s16 = scalar_lea.vmem [#allocation8], %s1218_s20 }
  0x77   : > { %1276 = vmatpush3.bf16.msra.mxu0 %v1440_v3  ;;  %1284 = vmatpush3.bf16.msra.mxu1 %v1441_v4  ;;  %s404_s26 = scalar_lea.vmem %s2055_s1, %s403_s15  ;;  %s1100_s22 = sshll.u32 %s401_s16, 4  ;;  %s2006_s22 = int_to_ptr.vmem [resolvable:$true] %s1100_s22 }
  0x78   : > { %1289 = vmatprep.subr.bf16.mxu0 %v1641_v0  ;;  %1295 = vmatprep.subr.bf16.mxu1 %v1641_v0  ;;  %v1231_v28 = vld [vmem:[%s404_s26] ss:$0 sm:$0xff]  ;;  %s1245_s26 = sshll.u32 %s1626_s12, 7  ;;  %s2086_s21 = sld [smem:[#allocation15_spill]] }
  0x79   : > { %p2087_p1 = scmp.ne.s32.totalorder %s2081_s24, 0  ;;  %s1649_s12 = smov [#allocation8]  }
  0x7a   : > { %1278 = vmatmul.mubr.msk.bf16.vlgmr.msra.gmra.mrb[0].mxu0 %vm434_vm1, %v410_v6  ;;  %1286 = vmatmul.mubr.msk.bf16.vlgmr.msra.gmra.mrb[0].mxu1 %vm434_vm1, %v410_v6  ;;  %s1552_s20 = sshll.u32 %s1649_s12, 4  ;;  %s1553_s20 = int_to_ptr.vmem [resolvable:$false] %s1552_s20 }
  0x7b   : > { %1291 = vmatprep.mubr.msk.bf16.mxu0 %vm1642_vm0, %v1641_v0  ;;  %1297 = vmatprep.mubr.msk.bf16.mxu1 %vm1642_vm0, %v1641_v0  ;;  %p1555_p5 = scmp.lt.s32.totalorder %s2006_s22, %s1553_s20 }
 0x14d   : > { %v472_v9 = vpop.f32.mrb[0].mxu0  ;;  %v539_v11 = vpop.f32.mrb[0].mxu1 }
 0x14e   : > { %v473_v10 = vadd.f32 %v1222_v7, %v472_v9  ;;  %v1279_v12 = vpop.f32.mrb[1].mxu0  ;;  %v540_v13 = vadd.f32 %v1226_v8, %v539_v11  ;;  %v1287_v15 = vpop.f32.mrb[1].mxu1 }
 0x14f   : > { %v475_v14 = vpop.f32.mrb[2].mxu0  ;;  %v542_v18 = vpop.f32.mrb[2].mxu1 }
 0x150   : > { %v545_v16 = vpack.c.bf16 %v473_v10, %v473_v10  ;;  %v1280_v17 = vpop.f32.mrb[3].mxu0  ;;  %v1925_v19 = vpack.c.bf16 %v540_v13, %v540_v13  ;;  %v1288_v20 = vpop.f32.mrb[3].mxu1 }
 0x152   : > { %768 = vrot.lane.b32.xlu1 %v545_v16, %s1643_s23  ;;  %666 = vrot.lane.b32.xlu0 %v545_v16, %s1644_s8  ;;  %v553_v21 = vsel %vm548_vm2, %v1925_v19, 0 }
 0x153   : > { %1290 = vmatpush3.bf16.xpose.msra.mxu0 %v553_v21 }
 0x154   : > { %1301 = vmatprep.subr.bf16.mxu0 %v1641_v0 }
 0x156   : > { %880 = vrot.lane.b32.xlu1 %v545_v16, %s1645_s9  ;;  %770 = vrot.lane.b32.xlu0 %v1925_v19, %s1644_s8  ;;  %s1548_s8 = scalar_lea.vmem %s2006_s22, 128 }
 0x157   : > { %p1549_p12 = scmp.ne.s32.totalorder %s2006_s22, %s1548_s8 }
 0x159   : > { %p1550_p10 = pnand %p1549_p12, %p2087_p1 }
 0x15a   : > { %1292 = vmatmul.mubr.msk.bf16.vlgmr.msra.gmra.mrb[4].mxu0 %vm548_vm2, %v545_v16 }
 0x15b   : > { %1302 = vmatpush3.bf16.xpose.msra.mxu0 %v553_v21  ;;  %1303 = vmatprep.mubr.msk.bf16.mxu0 %vm1642_vm0, %v1641_v0  ;;  %p1551_p3 = pneg %p1550_p10 }
 0x15c   : > { %1313 = vmatprep.subr.bf16.mxu0 %v1641_v0 }
 0x1c4   : > { %v667_v22 = vpop.permute.xlu0 %666  ;;  %v769_v25 = vpop.permute.xlu1 %768 }
 0x1c5   : > { %1304 = vmatmul.mubr.msk.bf16.vlgmr.msra.gmra.mrb[8].mxu0 %vm548_vm2, %v667_v22 }
 0x1c6   : > { %1315 = vmatprep.mubr.msk.bf16.mxu0 %vm1642_vm0, %v1641_v0 }
 0x1c8   : > { %v771_v23 = vpop.permute.xlu0 %770  ;;  %v881_v26 = vpop.permute.xlu1 %880 }
 0x1c9   : > { %v776_v24 = vsel %vm548_vm2, %v771_v23, 0 }
 0x1ca   : > { %1314 = vmatpush3.bf16.xpose.msra.mxu0 %v776_v24 }
 0x1cb   : > { %1325 = vmatprep.subr.bf16.mxu0 %v1641_v0 }
 0x1d1   : > { %1316 = vmatmul.mubr.msk.bf16.vlgmr.msra.gmra.mrb[12].mxu0 %vm548_vm2, %v769_v25 }
 0x1d2   : > { %1326 = vmatpush3.bf16.xpose.msra.mxu0 %v776_v24  ;;  %1327 = vmatprep.mubr.msk.bf16.mxu0 %vm1642_vm0, %v1641_v0 }
 0x1d3   : > { %1337 = vmatprep.subr.bf16.mxu0 %v1641_v0 }
 0x1d9   : > { %1328 = vmatmul.mubr.msk.bf16.vlgmr.msra.gmra.mrb[16].mxu0 %vm548_vm2, %v881_v26 }
 0x1da   : > { %1341 = vmatprep.mubr.msk.bf16.mxu0 %vm1642_vm0, %v1641_v0 }
 0x22d   : > { %v589_v27 = vpop.f32.mrb[4].mxu0 }
 0x22e   : > { %v595_v29 = vmul.f32 0.35355338, %v589_v27  ;;  %v1293_v30 = vpop.f32.mrb[5].mxu0 }
 0x22f   : > { %v592_v31 = vpop.f32.mrb[6].mxu0 }
 0x230   : > { %v1294_v32 = vpop.f32.mrb[7].mxu0  ;;  %v602_v33 = vadd.f32 %v1231_v28, %v595_v29 }
 0x232   : > { %v603_v34 = vsel %vm548_vm2, %v602_v33, -inf }
 0x233   : > { %604 = vmax.xlane.f32.xlu0 %v603_v34 }
 0x298   : > { %v705_v35 = vpop.f32.mrb[8].mxu0 }
 0x299   : > { %v711_v36 = vmul.f32 0.35355338, %v705_v35  ;;  %v1305_v37 = vpop.f32.mrb[9].mxu0 }
 0x29a   : > { %v708_v38 = vpop.f32.mrb[10].mxu0 }
 0x29b   : > { %v1306_v39 = vpop.f32.mrb[11].mxu0  ;;  %v712_v40 = vadd.f32 %v1231_v28, %v711_v36  ;;  %v1442_v38 = vld [vmem:[%s2060_s6] sm:$0xff]  }
 0x29c   : > { %1338 = vmatpush3.bf16.msra.mxu0 %v1442_v38 }
 0x29d   : > { %v713_v41 = vsel %vm548_vm2, %v712_v40, -inf  ;;  %1339 = vmatprep.subr.bf16.mxu0 %v1641_v0 }
 0x29e   : > { %714 = vmax.xlane.f32.xlu1 %v713_v41 }
 0x2a4   : > { %v812_v42 = vpop.f32.mrb[12].mxu0 }
 0x2a5   : > { %v818_v43 = vmul.f32 0.35355338, %v812_v42  ;;  %v1317_v44 = vpop.f32.mrb[13].mxu0 }
 0x2a6   : > { %v815_v45 = vpop.f32.mrb[14].mxu0 }
 0x2a7   : > { %v1318_v46 = vpop.f32.mrb[15].mxu0  ;;  %v819_v47 = vadd.f32 %v1231_v28, %v818_v43  ;;  %v1443_v43 = vld [vmem:[%s2060_s6 + $0x8] sm:$0xff]  }
 0x2a8   : > { %1340 = vmatpush3.bf16.msra.mxu0 %v1443_v43 }
 0x2a9   : > { %v820_v48 = vsel %vm548_vm2, %v819_v47, -inf }
 0x2aa   : > { %821 = vmax.xlane.f32.xlu0 %v820_v48 }
 0x2ac   : > { %v919_v49 = vpop.f32.mrb[16].mxu0 }
 0x2ad   : > { %v925_v50 = vmul.f32 0.35355338, %v919_v49  ;;  %v1329_v51 = vpop.f32.mrb[17].mxu0 }
 0x2ae   : > { %v922_v52 = vpop.f32.mrb[18].mxu0 }
 0x2af   : > { %v1330_v53 = vpop.f32.mrb[19].mxu0  ;;  %v926_v54 = vadd.f32 %v1231_v28, %v925_v50 }
 0x2b1   : > { %v927_v55 = vsel %vm548_vm2, %v926_v54, -inf }
 0x2b2   : > { %928 = vmax.xlane.f32.xlu0 %v927_v55 }
 0x2c0   : > { %v605_v56 = vpop.xlane.xlu0 %604 }
 0x2c1   : > { %v606_v57 = vsub.f32 %v602_v33, %v605_v56 }
 0x2c3   : > { %v607_v58 = vmul.f32 1.442695, %v606_v57 }
 0x2c5   : > { %1444 = vpow2.f32 %v607_v58  ;;  %v1239_v58 = vld [vmem:[%s2061_s7] ss:$0 sm:$0xff] }
 0x2cf   : > { %v1445_v59 = vpop.eup %1444 }
 0x2d0   : > { %v609_v60 = vsel %vm548_vm2, %v1445_v59, 0.0 }
 0x2d1   : > { %610 = vadd.xlane.f32.xlu1 %v609_v60 }
 0x32b   : > { %v715_v61 = vpop.xlane.xlu1 %714 }
 0x32c   : > { %v716_v62 = vsub.f32 %v712_v40, %v715_v61 }
 0x32e   : > { %v717_v63 = vmul.f32 1.442695, %v716_v62 }
 0x330   : > { %1446 = vpow2.f32 %v717_v63 }
 0x337   : > { %v822_v1 = vpop.xlane.xlu0 %821 }
 0x338   : > { %v823_v2 = vsub.f32 %v819_v47, %v822_v1 }
 0x33a   : > { %v1447_v3 = vpop.eup %1446  ;;  %v824_v4 = vmul.f32 1.442695, %v823_v2 }
 0x33b   : > { %v719_v6 = vsel %vm548_vm2, %v1447_v3, 0.0 }
 0x33c   : > { %1448 = vpow2.f32 %v824_v4  ;;  %720 = vadd.xlane.f32.xlu0 %v719_v6 }
 0x33f   : > { %v929_v7 = vpop.xlane.xlu0 %928 }
 0x340   : > { %v930_v8 = vsub.f32 %v926_v54, %v929_v7 }
 0x342   : > { %v931_v9 = vmul.f32 1.442695, %v930_v8 }
 0x344   : > { %1450 = vpow2.f32 %v931_v9  ;;  %v1243_v9 = vld [vmem:[%s2085_s29] ss:$0 sm:$0xff] }
 0x346   : > { %v1449_v10 = vpop.eup %1448 }
 0x347   : > { %v826_v11 = vsel %vm548_vm2, %v1449_v10, 0.0 }
 0x348   : > { %827 = vadd.xlane.f32.xlu1 %v826_v11 }
 0x34e   : > { %v1451_v12 = vpop.eup %1450 }
 0x34f   : > { %v933_v13 = vsel %vm548_vm2, %v1451_v12, 0.0 }
 0x350   : > { %934 = vadd.xlane.f32.xlu0 %v933_v13 }
 0x359   : > { %616 = vrot.lane.b32.xlu1 %v1925_v19, %s1643_s23  ;;  %s1648_s23 = smov 24  }
 0x35e   : > { %v611_v14 = vpop.xlane.xlu1 %610 }
 0x35f   : > { %1452 = vrcp.f32 %v611_v14 }
 0x366   : > { %832 = vrot.lane.b32.xlu0 %v1925_v19, %s1645_s9  ;;  %s1554_s9 = scalar_lea.vmem %s1553_s20, 256 }
 0x367   : > { %p1556_p9 = scmp.lt.s32.totalorder %s1554_s9, %s1548_s8 }
 0x369   : > { %v1453_v16 = vpop.eup %1452  ;;  %p1557_p11 = por %p1556_p9, %p1555_p5 }
 0x36a   : > { %v613_v18 = vmul.f32 %v1453_v16, %v1445_v59 }
 0x36b   : > { %p1558_p0 = pnand %p1557_p11, %p1551_p3 }
 0x36c   : > { %v614_v22 = vpack.c.bf16 %v613_v18, %v613_v18 }
 0x3c9   : > { %v721_v15 = vpop.xlane.xlu0 %720 }
 0x3ca   : > { %1454 = vrcp.f32 %v721_v15 }
 0x3d4   : > { %v1455_v23 = vpop.eup %1454 }
 0x3d5   : > { %v828_v17 = vpop.xlane.xlu1 %827  ;;  %v723_v19 = vmul.f32 %v1455_v23, %v1447_v3 }
 0x3d6   : > { %1456 = vrcp.f32 %v828_v17 }
 0x3d7   : > { %v724_v26 = vpack.c.bf16 %v723_v19, %v723_v19 }
 0x3d9   : > { %v617_v20 = vpop.permute.xlu1 %616 }
 0x3da   : > { %v623_v21 = vsel %vm621_vm3, %v617_v20, 0 }
 0x3db   : > { %1296 = vmatpush3.bf16.msra.mxu1 %v623_v21 }
 0x3dc   : > { %1307 = vmatprep.subr.bf16.mxu1 %v1641_v0 }
 0x3dd   : > { %v935_v24 = vpop.xlane.xlu0 %934 }
 0x3de   : > { %1298 = vmatmul.mubr.msk.bf16.vlgmr.msra.gmra.mrb[4].mxu1 %vm548_vm2, %v614_v22  ;;  %1458 = vrcp.f32 %v935_v24 }
 0x3df   : > { %1308 = vmatpush3.bf16.msra.mxu1 %v623_v21  ;;  %1309 = vmatprep.mubr.msk.bf16.mxu1 %vm1642_vm0, %v1641_v0 }
 0x3e0   : > { %1319 = vmatprep.subr.bf16.mxu1 %v1641_v0  ;;  %v1457_v27 = vpop.eup %1456 }
 0x3e1   : > { %v833_v25 = vpop.permute.xlu0 %832  ;;  %v830_v29 = vmul.f32 %v1457_v27, %v1449_v10 }
 0x3e2   : > { %v838_v28 = vsel %vm621_vm3, %v833_v25, 0 }
 0x3e3   : > { %v831_v30 = vpack.c.bf16 %v830_v29, %v830_v29 }
 0x3e6   : > { %1310 = vmatmul.mubr.msk.bf16.vlgmr.msra.gmra.mrb[8].mxu1 %vm548_vm2, %v724_v26 }
 0x3e7   : > { %1320 = vmatpush3.bf16.msra.mxu1 %v838_v28  ;;  %1321 = vmatprep.mubr.msk.bf16.mxu1 %vm1642_vm0, %v1641_v0 }
 0x3e8   : > { %1331 = vmatprep.subr.bf16.mxu1 %v1641_v0  ;;  %v1459_v31 = vpop.eup %1458 }
 0x3e9   : > { %v937_v32 = vmul.f32 %v1459_v31, %v1451_v12 }
 0x3eb   : > { %v938_v33 = vpack.c.bf16 %v937_v32, %v937_v32 }
 0x3ee   : > { %1322 = vmatmul.mubr.msk.bf16.vlgmr.msra.gmra.mrb[12].mxu1 %vm548_vm2, %v831_v30 }
 0x3ef   : > { %1332 = vmatpush3.bf16.msra.mxu1 %v838_v28  ;;  %1333 = vmatprep.mubr.msk.bf16.mxu1 %vm1642_vm0, %v1641_v0 }
 0x3f6   : > { %1334 = vmatmul.mubr.msk.bf16.vlgmr.msra.gmra.mrb[16].mxu1 %vm548_vm2, %v938_v33 }
 0x4b1   : > { %v659_v34 = vpop.f32.mrb[4].mxu1 }
 0x4b2   : > { %v1299_v35 = vpop.f32.mrb[5].mxu1 }
 0x4b3   : > { %v662_v36 = vpop.f32.mrb[6].mxu1 }
 0x4b4   : > { %v1300_v37 = vpop.f32.mrb[7].mxu1 }
 0x4b9   : > { %v762_v39 = vpop.f32.mrb[8].mxu1 }
 0x4ba   : > { %983 = vrot.lane.b32.xlu1 %v762_v39, %s1646_s17  ;;  %v1311_v40 = vpop.f32.mrb[9].mxu1 }
 0x4bb   : > { %v765_v41 = vpop.f32.mrb[10].mxu1 }
 0x4bc   : > { %v1312_v42 = vpop.f32.mrb[11].mxu1 }
 0x4c1   : > { %v874_v44 = vpop.f32.mrb[12].mxu1 }
 0x4c2   : > { %987 = vrot.lane.b32.xlu1 %v874_v44, %s1647_s25  ;;  %v1323_v45 = vpop.f32.mrb[13].mxu1  ;;  %s2004_s25 = scalar_lea.hbm %s2086_s21, %s1245_s26 }
 0x4c3   : > { %v877_v46 = vpop.f32.mrb[14].mxu1 }
 0x4c4   : > { %v1324_v47 = vpop.f32.mrb[15].mxu1 }
 0x4c9   : > { %v976_v48 = vpop.f32.mrb[16].mxu1 }
 0x4ca   : > { %991 = vrot.lane.b32.xlu0 %v976_v48, %s1648_s23  ;;  %v1335_v0 = vpop.f32.mrb[17].mxu1  ;;  %s1086_s23 = scalar_lea.sflag [#allocation4], %s1885_s28 }
 0x4cb   : > { %v979_v49 = vpop.f32.mrb[18].mxu1 }
 0x4cc   : > { %v1336_v50 = vpop.f32.mrb[19].mxu1 }
 0x52c   : > { %v984_v51 = vpop.permute.xlu1 %983 }
 0x52d   : > { %v994_v53 = vsel %vm548_vm2, %v659_v34, %v984_v51 }
 0x534   : > { %v988_v52 = vpop.permute.xlu1 %987 }
 0x535   : > { %v996_v54 = vsel %vm995_vm4, %v994_v53, %v988_v52 }
 0x53c   : > { %v992_v55 = vpop.permute.xlu0 %991 }
 0x53d   : > { %v998_v56 = vsel %vm997_vm5, %v996_v54, %v992_v55 }
 0x53e   : > { %v999_v57 = vpack.c.bf16 %v998_v56, %v998_v56 }
 0x540   : > { %1342 = vmatmul.mubr.msk.bf16.vlgmr.msra.gmra.mrb[20].mxu0 %vm434_vm1, %v999_v57 }
 0x613   : > { %v1060_v59 = vpop.f32.mrb[20].mxu0 }
 0x614   : > { %v1061_v60 = vadd.f32 %v1239_v58, %v1060_v59  ;;  %v1343_v61 = vpop.f32.mrb[21].mxu0 }
 0x615   : > { %v1063_v62 = vpop.f32.mrb[22].mxu0 }
 0x616   : > { %v1066_v63 = vadd.f32 %v1061_v60, %v1907_v5  ;;  %v1344_v1 = vpop.f32.mrb[23].mxu0 }
 0x618   : > { %v1067_v2 = vmul.f32 %v1066_v63, %v1066_v63 }
 0x61a   : > { %v1068_v3 = vsel %vm434_vm1, %v1067_v2, 0.0 }
 0x61b   : > { %1069 = vadd.xlane.f32.xlu1 %v1068_v3 }
 0x6a8   : > { %v1070_v4 = vpop.xlane.xlu1 %1069 }
 0x6a9   : > { %v1072_v6 = vmul.f32 0.03125, %v1070_v4 }
 0x6ab   : > { %v1073_v7 = vadd.f32 1e-06, %v1072_v6 }
 0x6ad   : > { %1460 = vrsqrt.f32 %v1073_v7 }
 0x6b7   : > { %v1461_v8 = vpop.eup %1460 }
 0x6b8   : > { %v1075_v5 = vmul.f32 %v1461_v8, %v1066_v63 }
 0x6ba   : > { %v1083_v10 = vmul.f32 %v1243_v9, %v1075_v5 }
 0x6bc   : > { %1084 = vst.msk [vmem:[%s401_s16] sm:$0xff] %vm434_vm1, %v1083_v10 }
 0x6bd   : > { %1561 = shalt.err (!%p1558_p0)
}
 0x6be   : > { %s1562_s28 = scalar_lea.hbm %s2004_s25, 128  ;;  %s1566_s29 = scalar_lea.hbm %s2086_s21, 256 }
 0x6bf   : > { %p1563_p4 = scmp.ne.s32.totalorder %s2004_s25, %s1562_s28  ;;  %p1567_p7 = scmp.lt.u32.totalorder %s2004_s25, %s2086_s21 }
 0x6c0   : > { %p1568_p2 = scmp.lt.u32.totalorder %s1566_s29, %s1562_s28  ;;  %p1570_p12 = scmp.lt.u32.totalorder %s1562_s28, %s2004_s25 }
 0x6c1   : > { %p1564_p13 = pnand %p1563_p4, %p2087_p1 }
 0x6c2   : > { %p1569_p8 = por %p1568_p2, %p1567_p7 }
 0x6c3   : > { %p1565_p6 = pneg %p1564_p13 }
 0x6c4   : > { %p1571_p10 = por %p1570_p12, %p1569_p8 }
 0x6c6   : > { %p1572_p3 = pnand %p1571_p10, %p1565_p6 }
 0x6c8   : > { %1575 = shalt.err (!%p1572_p3)
}
 0x6c9   : > { %1355 = dma.vmem_to_hbm [thread:$0]  (%p2087_p1), %s2006_s22, 128, %s2004_s25, %s1086_s23  }
 0x6ca PF: > { %s2088_s17 = sld [smem:[#allocation12_spill]]  ;;  %s2089_s19 = sld [smem:[#allocation13_spill]] }
 0x6cb   : > { %p2091_p9 = scmp.ge.s32.totalorder %s1634_s14, 2 }
 0x6d0   : > { %s1112_s8 = sand.u32 1, %s2088_s17   ;;  %p2090_p5 = scmp.ne.s32.totalorder %s2089_s19, 0 }
 0x6d1   : > { %s1113_s12 = scalar_lea.sflag [#allocation4], %s1112_s8 }
 0x6d2   : > { %p1369_p11 = pnand %p2091_p9, %p2090_p5 }
 0x6d4   : > { %1609 = dma.done.wait (!%p1369_p11), %s1113_s12, 128  }
 0x6d5   : > { %1611 = vsyncadd (!%p1369_p11), %s1113_s12, 4294967168  ;;  %s26_s14 = sadd.s32 1, %s1634_s14   ;;  %s2092_s24 = smov %s2099_s30 }
 0x6d6   : > { %p23_p0 = scmp.ge.s32.totalorder %s26_s14, 4   ;;  %s2093_s30 = smov %s1618_s10 }
 0x6d7   : > { %s2094_s10 = smov %s1622_s11  ;;  %s2095_s11 = smov %s1842_s27 }
 0x6d8   : > { %s2096_s12 = smov %s1630_s13  ;;  %s2097_s13 = smov %s2092_s24 }
 0x6d9   :  { %25 = sbr.rel (!%p23_p0) target bundleno = 10 (0xa), region = 113 }
 0x6e0   :  { %1118 = vsyncpa [#allocation3], 1 }
 0x6e1   :  { %1120 = vsyncpa [#allocation3 + $0x1], 1 }
 0x6e2   :  { %1121 = vsyncpa [#allocation6], 1 }
 0x6e3   :  { %1122 = vsyncpa [#allocation4], 1 }
 0x6e4   :  { %1124 = vsyncpa [#allocation4 + $0x1], 1 }

</bundles_post_ra>
